<compile_context>
chip_gen: v5e
topology: v5e:2x2
jax: 0.10.0
libtpu: 0.0.40
codegen_flags: <defaults>
</compile_context>

<pallas_src>
import functools

import jax
import jax.numpy as jnp
from jax.experimental import pallas as pl
from jax.experimental.pallas import tpu as pltpu


def _round_up(x, m):
    return ((x + m - 1) // m) * m


def _gaussian_actor_kernel(x_ref, w1_ref, b1_ref, w2_ref, b2_ref, out_ref,
                           *, act_dim, logstd_min, logstd_max):
    # Hot path: two matmuls (MXU) + bias/ReLU/masked-clip (VPU), fused in VMEM.
    x = x_ref[...]                                                      # (TB, D)
    h = jnp.dot(x, w1_ref[...], preferred_element_type=jnp.float32)     # (TB, H) f32
    h = jnp.maximum(h + b1_ref[...].astype(jnp.float32), 0.0)           # ReLU in f32
    out = jnp.dot(h.astype(w2_ref.dtype), w2_ref[...],
                  preferred_element_type=jnp.float32)                   # (TB, OW) f32
    out = out + b2_ref[...].astype(jnp.float32)

    # Clip only the logstd columns (col >= act_dim); mean columns pass through.
    # Padded columns (>= 2*act_dim) are discarded by the wrapper slice.
    col = jax.lax.broadcasted_iota(jnp.int32, out.shape, 1)
    clipped = jnp.clip(out, logstd_min, logstd_max)
    out = jnp.where(col >= act_dim, clipped, out)

    out_ref[...] = out.astype(out_ref.dtype)                            # full-lane store


def gaussian_actor_forward(x, w1, b1, w2, b2, *,
                           logstd_min=-20.0, logstd_max=2.0,
                           block_batch=512):
    """Fused GaussianActor.forward. Returns (mean, logstd).

    x : (B, D), w1 : (D, H), b1 : (H,) or (1, H),
    w2 : (H, 2A), b2 : (2A,) or (1, 2A).
    For v6e/v7x throughput, pass x/w1/w2 as bfloat16 (accumulation stays f32).
    """
    B, D = x.shape
    H = w1.shape[1]
    two_a = w2.shape[1]
    assert two_a % 2 == 0
    act_dim = two_a // 2

    b1 = b1.reshape(1, H)
    b2 = b2.reshape(1, two_a)

    # --- lane-dense fused output: pad output feature width to a multiple of 128
    # (zero columns are free on the MXU and make the stores unmasked).
    out_w = _round_up(two_a, 128)
    if out_w != two_a:
        w2 = jnp.pad(w2, ((0, 0), (0, out_w - two_a)))
        b2 = jnp.pad(b2, ((0, 0), (0, out_w - two_a)))

    # --- batch tiling: largest tile up to `block_batch`, multiple of 8 sublanes.
    tb = _round_up(min(block_batch, _round_up(B, 8)), 8)
    b_pad = _round_up(B, tb)
    if b_pad != B:
        x = jnp.pad(x, ((0, b_pad - B), (0, 0)))
    num_blocks = b_pad // tb

    # --- VMEM budget: double-buffered x/out tiles + resident params + f32 temps.
    dtype_bytes = jnp.dtype(x.dtype).itemsize
    working_bytes = (2 * tb * (D + out_w) * dtype_bytes
                     + (D * H + H + H * out_w + out_w) * dtype_bytes
                     + 2 * tb * max(H, out_w) * 4)
    vmem_limit = int(min(64 << 20, max(32 << 20, 2 * working_bytes)))

    kernel = functools.partial(_gaussian_actor_kernel,
                               act_dim=act_dim,
                               logstd_min=float(logstd_min),
                               logstd_max=float(logstd_max))

    fused = pl.pallas_call(
        kernel,
        out_shape=jax.ShapeDtypeStruct((b_pad, out_w), x.dtype),
        grid=(num_blocks,),
        in_specs=[
            pl.BlockSpec((tb, D), lambda i: (i, 0)),       # x: tiled over batch
            pl.BlockSpec((D, H), lambda i: (0, 0)),        # w1: VMEM-resident
            pl.BlockSpec((1, H), lambda i: (0, 0)),        # b1: VMEM-resident
            pl.BlockSpec((H, out_w), lambda i: (0, 0)),    # w2: VMEM-resident
            pl.BlockSpec((1, out_w), lambda i: (0, 0)),    # b2: VMEM-resident
        ],
        out_specs=pl.BlockSpec((tb, out_w), lambda i: (i, 0)),
        compiler_params=pltpu.CompilerParams(
            dimension_semantics=("parallel",),
            vmem_limit_bytes=vmem_limit),
    )(x, w1, b1, w2, b2)

    # Free XLA slices outside the kernel: drop batch padding + split mean/logstd.
    mean = fused[:B, :act_dim]
    logstd = fused[:B, act_dim:two_a]
    return mean, logstd


def _reference_forward(x, w1, b1, w2, b2, logstd_min=-20.0, logstd_max=2.0):
    h = jnp.maximum(x @ w1 + b1.reshape(1, -1), 0.0)
    out = h @ w2 + b2.reshape(1, -1)
    act_dim = out.shape[-1] // 2
    mean, logstd = out[:, :act_dim], out[:, act_dim:]
    return mean, jnp.clip(logstd, logstd_min, logstd_max)


if __name__ == "__main__":
    # Small shapes consistent with the module: state dim D, hidden H, action dim A.
    input_dim, hidden_dim, act_dim = 32, 32, 8

    key = jax.random.PRNGKey(0)
    k_x, k_w1, k_b1, k_w2, k_b2, k_x2 = jax.random.split(key, 6)

    # Deterministic parameter init (PyTorch Linear-style uniform bounds).
    lim1 = 1.0 / jnp.sqrt(jnp.float32(input_dim))
    lim2 = 1.0 / jnp.sqrt(jnp.float32(hidden_dim))
    w1 = jax.random.uniform(k_w1, (input_dim, hidden_dim), jnp.float32, -lim1, lim1)
    b1 = jax.random.uniform(k_b1, (1, hidden_dim), jnp.float32, -lim1, lim1)
    # conditioned_logstd=True -> output layer produces 2 * act_dim features.
    w2 = jax.random.uniform(k_w2, (hidden_dim, 2 * act_dim), jnp.float32, -lim2, lim2)
    b2 = jax.random.uniform(k_b2, (1, 2 * act_dim), jnp.float32, -lim2, lim2)

    # --- test 1: tiny batch (single grid step, single-shot-like path) ---
    batch = 8
    x = jax.random.normal(k_x, (batch, input_dim), dtype=jnp.float32)
    mean, logstd = gaussian_actor_forward(x, w1, b1, w2, b2)
    jax.block_until_ready((mean, logstd))
    ref_mean, ref_logstd = _reference_forward(x, w1, b1, w2, b2)
    assert mean.shape == (batch, act_dim) and logstd.shape == (batch, act_dim)
    assert jnp.allclose(mean, ref_mean, atol=1e-4, rtol=1e-4)
    assert jnp.allclose(logstd, ref_logstd, atol=1e-4, rtol=1e-4)

    # --- test 2: larger, non-multiple batch exercising the grid + batch padding ---
    batch2 = 1030
    x2 = jax.random.normal(k_x2, (batch2, input_dim), dtype=jnp.float32)
    mean2, logstd2 = gaussian_actor_forward(x2, w1, b1, w2, b2)
    jax.block_until_ready((mean2, logstd2))
    ref_mean2, ref_logstd2 = _reference_forward(x2, w1, b1, w2, b2)
    assert mean2.shape == (batch2, act_dim) and logstd2.shape == (batch2, act_dim)
    assert jnp.allclose(mean2, ref_mean2, atol=1e-4, rtol=1e-4)
    assert jnp.allclose(logstd2, ref_logstd2, atol=1e-4, rtol=1e-4)

    # TODO(synk): sample()/evaluate() (Normal rsample / log_prob / entropy) are
    # distribution-level ops kept outside this kernel; only forward() is fused here.
    print("KERNEL_OK")
</pallas_src>

<mosaic_0001>
module attributes {stable_mosaic.version = 11 : i64} {
  func.func @_gaussian_actor_kernel(%arg0: i32, %arg1: memref<8x32xf32, #tpu.memory_space<vmem>>, %arg2: memref<32x32xf32, #tpu.memory_space<vmem>>, %arg3: memref<1x32xf32, #tpu.memory_space<vmem>>, %arg4: memref<32x128xf32, #tpu.memory_space<vmem>>, %arg5: memref<1x128xf32, #tpu.memory_space<vmem>>, %arg6: memref<8x128xf32, #tpu.memory_space<vmem>>) attributes {dimension_semantics = [#tpu.dimension_semantics<parallel>], iteration_bounds = array<i64: 1>, scalar_prefetch = 0 : i64, scratch_operands = 0 : i64, tpu.core_type = #tpu.core_type<tc>, window_params = [{transform_indices = @transform_0, window_bounds = array<i64: 8, 32>}, {pipeline_mode = #tpu.pipeline_mode<synchronous>, transform_indices = @transform_1, window_bounds = array<i64: 32, 32>}, {pipeline_mode = #tpu.pipeline_mode<synchronous>, transform_indices = @transform_2, window_bounds = array<i64: 1, 32>}, {pipeline_mode = #tpu.pipeline_mode<synchronous>, transform_indices = @transform_3, window_bounds = array<i64: 32, 128>}, {pipeline_mode = #tpu.pipeline_mode<synchronous>, transform_indices = @transform_4, window_bounds = array<i64: 1, 128>}, {transform_indices = @transform_5, window_bounds = array<i64: 8, 128>}]} {
    %c0 = arith.constant 0 : index
    %c0_0 = arith.constant 0 : index
    %0 = vector.load %arg1[%c0, %c0_0] : memref<8x32xf32, #tpu.memory_space<vmem>>, vector<8x32xf32>
    %c0_1 = arith.constant 0 : index
    %c0_2 = arith.constant 0 : index
    %1 = vector.load %arg2[%c0_1, %c0_2] : memref<32x32xf32, #tpu.memory_space<vmem>>, vector<32x32xf32>
    %cst = arith.constant dense<0.000000e+00> : vector<8x32xf32>
    %2 = tpu.matmul %0, %1, %cst {dimension_numbers = #tpu.dot_dimension_numbers<[1], [0], [0], [1], [0, 0, 1, 1], [], []>} : vector<8x32xf32>, vector<32x32xf32>, vector<8x32xf32> -> vector<8x32xf32>
    %c0_3 = arith.constant 0 : index
    %c0_4 = arith.constant 0 : index
    %3 = vector.load %arg3[%c0_3, %c0_4] : memref<1x32xf32, #tpu.memory_space<vmem>>, vector<1x32xf32>
    %4 = vector.broadcast %3 : vector<1x32xf32> to vector<8x32xf32>
    %5 = arith.addf %2, %4 : vector<8x32xf32>
    %cst_5 = arith.constant 0.000000e+00 : f32
    %6 = vector.broadcast %cst_5 : f32 to vector<8x32xf32>
    %7 = arith.maximumf %5, %6 : vector<8x32xf32>
    %c0_6 = arith.constant 0 : index
    %c0_7 = arith.constant 0 : index
    %8 = vector.load %arg4[%c0_6, %c0_7] : memref<32x128xf32, #tpu.memory_space<vmem>>, vector<32x128xf32>
    %cst_8 = arith.constant dense<0.000000e+00> : vector<8x128xf32>
    %9 = tpu.matmul %7, %8, %cst_8 {dimension_numbers = #tpu.dot_dimension_numbers<[1], [0], [0], [1], [0, 0, 1, 1], [], []>} : vector<8x32xf32>, vector<32x128xf32>, vector<8x128xf32> -> vector<8x128xf32>
    %c0_9 = arith.constant 0 : index
    %c0_10 = arith.constant 0 : index
    %10 = vector.load %arg5[%c0_9, %c0_10] : memref<1x128xf32, #tpu.memory_space<vmem>>, vector<1x128xf32>
    %11 = vector.broadcast %10 : vector<1x128xf32> to vector<8x128xf32>
    %12 = arith.addf %9, %11 : vector<8x128xf32>
    %13 = tpu.iota {dimensions = array<i32: 1>} : vector<8x128xi32>
    %cst_11 = arith.constant -2.000000e+01 : f32
    %cst_12 = arith.constant 2.000000e+00 : f32
    %14 = vector.broadcast %cst_11 : f32 to vector<8x128xf32>
    %15 = arith.maximumf %14, %12 : vector<8x128xf32>
    %16 = vector.broadcast %cst_12 : f32 to vector<8x128xf32>
    %17 = arith.minimumf %16, %15 : vector<8x128xf32>
    %c8_i32 = arith.constant 8 : i32
    %18 = vector.broadcast %c8_i32 : i32 to vector<8x128xi32>
    %19 = arith.cmpi sge, %13, %18 : vector<8x128xi32>
    %20 = arith.select %19, %17, %12 : vector<8x128xi1>, vector<8x128xf32>
    %c0_13 = arith.constant 0 : index
    %c0_14 = arith.constant 0 : index
    %21 = vector.load %arg6[%c0_13, %c0_14] : memref<8x128xf32, #tpu.memory_space<vmem>>, vector<8x128xf32>
    tpu.vector_store %arg6[%c0_13, %c0_14], %20 {strides = array<i32>} : memref<8x128xf32, #tpu.memory_space<vmem>>, vector<8x128xf32>,
    return
  }
  func.func @transform_0(%arg0: i32) -> (i32, i32) {
    %c0_i32 = arith.constant 0 : i32
    %c0_i32_0 = arith.constant 0 : i32
    return %arg0, %c0_i32 : i32, i32
  }
  func.func @transform_1(%arg0: i32) -> (i32, i32) {
    %c0_i32 = arith.constant 0 : i32
    %c0_i32_0 = arith.constant 0 : i32
    %c0_i32_1 = arith.constant 0 : i32
    return %c0_i32, %c0_i32_0 : i32, i32
  }
  func.func @transform_2(%arg0: i32) -> (i32, i32) {
    %c0_i32 = arith.constant 0 : i32
    %c0_i32_0 = arith.constant 0 : i32
    %c0_i32_1 = arith.constant 0 : i32
    return %c0_i32, %c0_i32_0 : i32, i32
  }
  func.func @transform_3(%arg0: i32) -> (i32, i32) {
    %c0_i32 = arith.constant 0 : i32
    %c0_i32_0 = arith.constant 0 : i32
    %c0_i32_1 = arith.constant 0 : i32
    return %c0_i32, %c0_i32_0 : i32, i32
  }
  func.func @transform_4(%arg0: i32) -> (i32, i32) {
    %c0_i32 = arith.constant 0 : i32
    %c0_i32_0 = arith.constant 0 : i32
    %c0_i32_1 = arith.constant 0 : i32
    return %c0_i32, %c0_i32_0 : i32, i32
  }
  func.func @transform_5(%arg0: i32) -> (i32, i32) {
    %c0_i32 = arith.constant 0 : i32
    %c0_i32_0 = arith.constant 0 : i32
    return %arg0, %c0_i32 : i32, i32
  }
}

</mosaic_0001>

<bundles_post_ra>
// kernel: tpu_custom_call.1
= control target key start
LH: loop header
LB: loop body
LE: loop exit
PB: predicated region body
PF: predicated region fallthrough
CT: control target
= control target key end

     0   :  { %10 = vsyncpa [#allocation3], 0  ;;  %s322_s0 = inlined_call_operand.hbm [shape: f32[8,32], index: 0, kind: input, shape index: {}]   ;;  %s323_s1 = inlined_call_operand.hbm [shape: f32[32,32], index: 1, kind: input, shape index: {}]   ;;  %s324_s2 = inlined_call_operand.vmem [shape: f32[1,32], index: 2, kind: input, shape index: {}]   ;;  %s325_s3 = inlined_call_operand.hbm [shape: f32[32,128], index: 3, kind: input, shape index: {}]   ;;  %s326_s4 = inlined_call_operand.vmem [shape: f32[1,128], index: 4, kind: input, shape index: {}]   ;;  %s327_s5 = inlined_call_operand.hbm [shape: f32[8,128], index: 5, kind: output, shape index: {}]  }
   0x1   :  { %11 = vsyncpa [#allocation6], 0  ;;  %s28_s20 = sshll.u32 %s323_s1, 4  ;;  %s29_s20 = int_to_ptr.hbm [resolvable:$true] %s28_s20 }
   0x2   :  { %12 = vsyncpa [#allocation4], 0  ;;  %s268_s21 = smov [#allocation5]   ;;  %s18_s25 = sshll.u32 %s322_s0, 4  ;;  %s19_s25 = int_to_ptr.hbm [resolvable:$true] %s18_s25 }
   0x3   :  { %s30_s22 = sshll.u32 %s268_s21, 4  ;;  %s269_s26 = smov 128   ;;  %s31_s22 = int_to_ptr.vmem [resolvable:$true] %s30_s22 }
   0x4   :  { %s270_s27 = smov 8   ;;  %s271_s28 = smov [#allocation2]  }
   0x5   :  { %36 = dma.hbm_to_vmem [thread:$0]  %s29_s20, 512, %s31_s22, [#allocation6], %s269_s26, %s269_s26, %s270_s27  }
   0x6   :  { %s20_s29 = sshll.u32 %s271_s28, 4  ;;  %s43_s7 = sshll.u32 %s325_s3, 4  ;;  %s21_s29 = int_to_ptr.vmem [resolvable:$true] %s20_s29  ;;  %s44_s7 = int_to_ptr.hbm [resolvable:$true] %s43_s7 }
   0x7   :  { %23 = dma.hbm_to_vmem [thread:$0]  %s19_s25, 128, %s21_s29, [#allocation3]  }
   0x8   :  { %s272_s1 = smov [#allocation7]  }
   0x9   :  { %s45_s8 = sshll.u32 %s272_s1, 4  ;;  %s46_s8 = int_to_ptr.vmem [resolvable:$true] %s45_s8 }
   0xa   :  { %51 = dma.hbm_to_vmem [thread:$0]  %s44_s7, 512, %s46_s8, [#allocation6], %s269_s26, %s269_s26, %s270_s27  }
   0xb   :  { %262 = dma.done.wait [#allocation3], 128  }
   0xc   :  { %263 = vsyncadd [#allocation3], 4294967168 }
   0xd   :  { %264 = dma.done.wait [#allocation6], 1024  }
   0xe   :  { %265 = vsyncadd [#allocation6], 4294966272  ;;  %v70_v0 = vld [vmem:[#allocation5 + $0x18] sm:$0xff]  ;;  %v69_v1 = vld [vmem:[#allocation5 + $0x10] sm:$0xff]  ;;  %vm75_vm0 = vcmask 261120   ;;  %v131_v13 = vlaneseq  ;;  %s273_s11 = smov [#allocation8]  }
   0xf   :  { %91 = vmatpush.msra.mxu0 %v70_v0  ;;  %v103_v2 = vld [vmem:[#allocation7 + $0x18] sm:$0xff]  ;;  %v68_v3 = vld [vmem:[#allocation5 + $0x8] sm:$0xff]  ;;  %v67_v4 = vld [vmem:[#allocation5] sm:$0xff]  ;;  %s143_s12 = sshll.u32 %s273_s11, 4  ;;  %s145_s15 = sshll.u32 %s327_s5, 4  ;;  %s144_s12 = int_to_ptr.vmem [resolvable:$true] %s143_s12  ;;  %s146_s15 = int_to_ptr.hbm [resolvable:$true] %s145_s15 }
  0x10   :  { %123 = vmatpush.msra.mxu1 %v103_v2  ;;  %v66_v5 = vld [vmem:[#allocation2] sm:$0xff]  ;;  %v102_v6 = vld [vmem:[#allocation7 + $0x10] sm:$0xff]  ;;  %v101_v7 = vld [vmem:[#allocation7 + $0x8] sm:$0xff]  ;;  %v132_v16 = vand.u32 127, %v131_v13 }
  0x11   :  { %92 = vmatpush.msra.mxu0 %v69_v1  ;;  %v100_v8 = vld [vmem:[#allocation7] sm:$0xff]  ;;  %v164_v9 = vld [vmem:[%s324_s2] ss:$0 sm:$0xff] }
  0x12   :  { %124 = vmatpush.msra.mxu1 %v102_v6  ;;  %v165_v14 = vld [vmem:[%s326_s4] ss:$0 sm:$0xff]  ;;  %vm135_vm1 = vcmp.ge.s32.totalorder %v132_v16, 8 }
  0x13   :  { %93 = vmatpush.msra.mxu0 %v68_v3 }
  0x14   :  { %125 = vmatpush.msra.mxu1 %v101_v7 }
  0x15   :  { %94 = vmatpush.msra.mxu0 %v67_v4 }
  0x16   :  { %156 = vmatmul.msk.f32.vlgmr.msra.gmra.mxu0 %vm75_vm0, %v66_v5  ;;  %126 = vmatpush.msra.mxu1 %v100_v8 }
  0x93   :  { %v96_v10 = vpop.f32.mrf.mxu0 }
  0x94   :  { %v97_v11 = vadd.f32 %v164_v9, %v96_v10 }
  0x96   :  { %v99_v12 = vmax.f32 %v97_v11, 0.0 }
  0x98   :  { %157 = vmatmul.msk.f32.vlgmr.msra.gmra.mxu1 %vm75_vm0, %v99_v12 }
 0x115   :  { %v128_v15 = vpop.f32.mrf.mxu1 }
 0x116   :  { %v129_v17 = vadd.f32 %v165_v14, %v128_v15 }
 0x118   :  { %v133_v18 = vmax.f32 %v129_v17, -20.0 }
 0x11a   :  { %v134_v19 = vmin.f32 %v133_v18, 2.0 }
 0x11c   :  { %v136_v20 = vsel %vm135_vm1, %v134_v19, %v129_v17 }
 0x11d   :  { %137 = vst [vmem:[#allocation8] sm:$0xff] %v136_v20 }
 0x11e   :  { %148 = dma.vmem_to_hbm [thread:$0]  %s144_s12, 128, %s146_s15, [#allocation4]  }
 0x11f   :  { %266 = dma.done.wait [#allocation4], 128  }
 0x120   :  { %267 = vsyncadd [#allocation4], 4294967168 }
 0x121   :  { %153 = vsyncpa [#allocation3], 1 }
 0x122   :  { %154 = vsyncpa [#allocation6], 1 }
 0x123   :  { %155 = vsyncpa [#allocation4], 1 }

</bundles_post_ra>
